<compile_context>
chip_gen: v7x
topology: tpu7x:2x2x1
jax: 0.10.0
libtpu: 0.0.40
codegen_flags: <defaults>
</compile_context>

<pallas_src>
import jax
import jax.numpy as jnp
from jax.experimental import pallas as pl
from jax.experimental.pallas import tpu as pltpu


def _round8(n):
    return -(-n // 8) * 8


def pack_params(params, state_dim):
    """Pack all weights/biases into one (R, C) f32 buffer (C = max(fc1, fc2)).

    Row layout (every section starts at a multiple of 8 rows):
      w1 rows for `state`  (state_dim, fc1)
      w1 rows for `action` (n_actions, fc1)
      b1 as a row          (1, fc1)
      w2                   (fc1, fc2)
      b2 as a row          (1, fc2)
      w3 as a row          (1, fc2)
    Returns (packed, b3_flat, meta) with static dims/offsets in `meta`.
    """
    w1, b1, w2, b2, w3, b3 = (params[k] for k in ("w1", "b1", "w2", "b2", "w3", "b3"))
    in1, fc1 = w1.shape
    n_actions = in1 - state_dim
    fc2 = w2.shape[1]
    C = max(fc1, fc2)

    def section(a, rows):
        a = a.astype(jnp.float32)
        return jnp.pad(a, ((0, rows - a.shape[0]), (0, C - a.shape[1])))

    rows = [_round8(state_dim), _round8(n_actions), 8, _round8(fc1), 8, 8]
    offs, o = [], 0
    for r in rows:
        offs.append(o)
        o += r
    o_w1s, o_w1a, o_b1, o_w2, o_b2, o_w3 = offs

    packed = jnp.concatenate([
        section(w1[:state_dim, :], rows[0]),
        section(w1[state_dim:, :], rows[1]),
        section(b1.reshape(1, -1), rows[2]),
        section(w2, rows[3]),
        section(b2.reshape(1, -1), rows[4]),
        section(w3.reshape(1, -1), rows[5]),   # (fc2, 1) column -> (1, fc2) row
    ], axis=0)

    meta = dict(state_dim=state_dim, n_actions=n_actions, fc1=fc1, fc2=fc2,
                o_w1s=o_w1s, o_w1a=o_w1a, o_b1=o_b1, o_w2=o_w2, o_b2=o_b2, o_w3=o_w3)
    return packed, b3.reshape(1).astype(jnp.float32), meta


def _make_kernel(meta, use_bf16):
    sd, na = meta["state_dim"], meta["n_actions"]
    fc1, fc2 = meta["fc1"], meta["fc2"]
    o_w1s, o_w1a, o_b1 = meta["o_w1s"], meta["o_w1a"], meta["o_b1"]
    o_w2, o_b2, o_w3 = meta["o_w2"], meta["o_b2"], meta["o_w3"]
    mm_dtype = jnp.bfloat16 if use_bf16 else jnp.float32

    def kernel(state_ref, action_ref, p_ref, b3_ref, q_ref):
        # Static, sublane-aligned slices of the single packed parameter block.
        w1s = p_ref[o_w1s:o_w1s + sd, 0:fc1]
        w1a = p_ref[o_w1a:o_w1a + na, 0:fc1]
        b1 = p_ref[o_b1:o_b1 + 1, 0:fc1]
        w2 = p_ref[o_w2:o_w2 + fc1, 0:fc2]
        b2 = p_ref[o_b2:o_b2 + 1, 0:fc2]
        w3r = p_ref[o_w3:o_w3 + 1, 0:fc2]

        s = state_ref[...].astype(mm_dtype)
        a = action_ref[...].astype(mm_dtype)

        # fc1: cat(state, action) @ W1^T + b1 == state @ W1_s + action @ W1_a + b1
        x = (jnp.dot(s, w1s.astype(mm_dtype), preferred_element_type=jnp.float32)
             + jnp.dot(a, w1a.astype(mm_dtype), preferred_element_type=jnp.float32)
             + b1)
        h1 = jnp.maximum(x, 0.0)                           # F.relu (f32 on VPU)

        # fc2
        x = jnp.dot(h1.astype(mm_dtype), w2.astype(mm_dtype),
                    preferred_element_type=jnp.float32) + b2
        h2 = jnp.maximum(x, 0.0)                           # F.relu

        # q1 head (out_features=1): VPU multiply + lane reduce instead of a
        # 1-column MXU matmul; b3 is added as an SMEM scalar.
        q_ref[...] = jnp.sum(h2 * w3r, axis=-1, keepdims=True) + b3_ref[0]

    return kernel


def critic_forward(state, action, params, *, batch_tile=None, use_bf16_matmul=False):
    """Pallas forward of CriticNetwork: q = q1(relu(fc2(relu(fc1(cat(s, a))))))."""
    B, state_dim = state.shape
    # In a training loop, hoist pack_params out of the per-step call.
    packed, b3, meta = pack_params(params, state_dim)
    R, C = packed.shape

    # Batch tile: full batch when small, else 512-row tiles (multiple of 8) so the
    # Pallas pipeline overlaps the DMA of tile i+1 with the compute of tile i.
    if batch_tile is None:
        Bt = B if B <= 512 else 512
    else:
        Bt = B if batch_tile >= B else _round8(batch_tile)
    grid = (pl.cdiv(B, Bt),)

    kernel = _make_kernel(meta, use_bf16_matmul)
    na = meta["n_actions"]

    return pl.pallas_call(
        kernel,
        out_shape=jax.ShapeDtypeStruct((B, 1), jnp.float32),
        grid=grid,
        in_specs=[
            pl.BlockSpec((Bt, state_dim), lambda i: (i, 0)),   # batch-tiled
            pl.BlockSpec((Bt, na), lambda i: (i, 0)),          # batch-tiled
            pl.BlockSpec((R, C), lambda i: (0, 0)),            # VMEM-resident params
            pl.BlockSpec(memory_space=pltpu.SMEM),             # b3 scalar in SMEM
        ],
        out_specs=pl.BlockSpec((Bt, 1), lambda i: (i, 0)),
        compiler_params=pltpu.CompilerParams(
            dimension_semantics=("parallel",)),                # v7x: split over 2 TCs
    )(state, action, packed, b3)


def init_params(key, input_dim, n_actions, fc1_dims, fc2_dims):
    """Deterministic init mimicking nn.Linear default U(-1/sqrt(fan_in), 1/sqrt(fan_in)).
    Weights stored transposed: shape (in_features, out_features)."""
    ks = jax.random.split(key, 6)

    def lin(kw, kb, fan_in, fan_out):
        bound = 1.0 / jnp.sqrt(jnp.float32(fan_in))
        w = jax.random.uniform(kw, (fan_in, fan_out), jnp.float32, -bound, bound)
        b = jax.random.uniform(kb, (fan_out,), jnp.float32, -bound, bound)
        return w, b

    in1 = input_dim + n_actions
    w1, b1 = lin(ks[0], ks[1], in1, fc1_dims)
    w2, b2 = lin(ks[2], ks[3], fc1_dims, fc2_dims)
    w3, b3 = lin(ks[4], ks[5], fc2_dims, 1)
    return {"w1": w1, "b1": b1, "w2": w2, "b2": b2, "w3": w3, "b3": b3}


def critic_ref(state, action, params):
    """Pure-JAX reference (mirrors the PyTorch forward exactly)."""
    x = jnp.concatenate([state, action], axis=1)
    x = jnp.maximum(x @ params["w1"] + params["b1"], 0.0)
    x = jnp.maximum(x @ params["w2"] + params["b2"], 0.0)
    return x @ params["w3"] + params["b3"]


# TODO(synk): checkpoint save/load and the Adam optimizer from the PyTorch module are
# host-side utilities with no Pallas equivalent; only the forward pass is implemented.

if __name__ == "__main__":
    # Small shapes consistent with the module: input_dims=[16], n_actions=4,
    # fc1_dims=32, fc2_dims=32, batch=8.
    B, input_dim, n_actions, fc1_dims, fc2_dims = 8, 16, 4, 32, 32

    key = jax.random.PRNGKey(0)
    k_state, k_action, k_params = jax.random.split(key, 3)
    state = jax.random.normal(k_state, (B, input_dim), jnp.float32)
    action = jax.random.normal(k_action, (B, n_actions), jnp.float32)
    params = init_params(k_params, input_dim, n_actions, fc1_dims, fc2_dims)

    q = critic_forward(state, action, params)
    jax.block_until_ready(q)

    q_ref = critic_ref(state, action, params)
    assert q.shape == (B, 1), q.shape
    assert jnp.allclose(q, q_ref, atol=1e-5, rtol=1e-5), "f32 mismatch vs reference"

    # Optional bf16-matmul path (v6e/v7x MXU lever); f32 accumulation, looser tol.
    q_bf16 = critic_forward(state, action, params, use_bf16_matmul=True)
    jax.block_until_ready(q_bf16)
    assert jnp.allclose(q_bf16, q_ref, atol=5e-2, rtol=5e-2), "bf16 mismatch vs reference"

    print("KERNEL_OK")
</pallas_src>

<mosaic_0001>
module attributes {stable_mosaic.version = 11 : i64} {
  func.func @kernel(%arg0: i32, %arg1: memref<8x16xf32, #tpu.memory_space<vmem>>, %arg2: memref<8x4xf32, #tpu.memory_space<vmem>>, %arg3: memref<80x32xf32, #tpu.memory_space<vmem>>, %arg4: memref<1xf32, #tpu.memory_space<smem>>, %arg5: memref<8x1xf32, #tpu.memory_space<vmem>>) attributes {dimension_semantics = [#tpu.dimension_semantics<parallel>], iteration_bounds = array<i64: 1>, scalar_prefetch = 0 : i64, scratch_operands = 0 : i64, tpu.core_type = #tpu.core_type<tc>, window_params = [{transform_indices = @transform_0, window_bounds = array<i64: 8, 16>}, {transform_indices = @transform_1, window_bounds = array<i64: 8, 4>}, {pipeline_mode = #tpu.pipeline_mode<synchronous>, transform_indices = @transform_2, window_bounds = array<i64: 80, 32>}, {transform_indices = @transform_3, window_bounds = array<i64: 1>}, {transform_indices = @transform_4, window_bounds = array<i64: 8, 1>}]} {
    %c0 = arith.constant 0 : index
    %c0_0 = arith.constant 0 : index
    %0 = vector.load %arg3[%c0, %c0_0] : memref<80x32xf32, #tpu.memory_space<vmem>>, vector<16x32xf32>
    %c16 = arith.constant 16 : index
    %c0_1 = arith.constant 0 : index
    %1 = vector.load %arg3[%c16, %c0_1] : memref<80x32xf32, #tpu.memory_space<vmem>>, vector<4x32xf32>
    %c24 = arith.constant 24 : index
    %c0_2 = arith.constant 0 : index
    %2 = vector.load %arg3[%c24, %c0_2] : memref<80x32xf32, #tpu.memory_space<vmem>>, vector<1x32xf32>
    %c32 = arith.constant 32 : index
    %c0_3 = arith.constant 0 : index
    %3 = vector.load %arg3[%c32, %c0_3] : memref<80x32xf32, #tpu.memory_space<vmem>>, vector<32x32xf32>
    %c64 = arith.constant 64 : index
    %c0_4 = arith.constant 0 : index
    %4 = vector.load %arg3[%c64, %c0_4] : memref<80x32xf32, #tpu.memory_space<vmem>>, vector<1x32xf32>
    %c72 = arith.constant 72 : index
    %c0_5 = arith.constant 0 : index
    %5 = vector.load %arg3[%c72, %c0_5] : memref<80x32xf32, #tpu.memory_space<vmem>>, vector<1x32xf32>
    %c0_6 = arith.constant 0 : index
    %c0_7 = arith.constant 0 : index
    %6 = vector.load %arg1[%c0_6, %c0_7] : memref<8x16xf32, #tpu.memory_space<vmem>>, vector<8x16xf32>
    %c0_8 = arith.constant 0 : index
    %c0_9 = arith.constant 0 : index
    %7 = vector.load %arg2[%c0_8, %c0_9] : memref<8x4xf32, #tpu.memory_space<vmem>>, vector<8x4xf32>
    %cst = arith.constant dense<0.000000e+00> : vector<8x32xf32>
    %8 = tpu.matmul %6, %0, %cst {dimension_numbers = #tpu.dot_dimension_numbers<[1], [0], [0], [1], [0, 0, 1, 1], [], []>} : vector<8x16xf32>, vector<16x32xf32>, vector<8x32xf32> -> vector<8x32xf32>
    %cst_10 = arith.constant dense<0.000000e+00> : vector<8x32xf32>
    %9 = tpu.matmul %7, %1, %cst_10 {dimension_numbers = #tpu.dot_dimension_numbers<[1], [0], [0], [1], [0, 0, 1, 1], [], []>} : vector<8x4xf32>, vector<4x32xf32>, vector<8x32xf32> -> vector<8x32xf32>
    %10 = arith.addf %8, %9 : vector<8x32xf32>
    %11 = vector.broadcast %2 : vector<1x32xf32> to vector<8x32xf32>
    %12 = arith.addf %10, %11 : vector<8x32xf32>
    %cst_11 = arith.constant 0.000000e+00 : f32
    %13 = vector.broadcast %cst_11 : f32 to vector<8x32xf32>
    %14 = arith.maximumf %12, %13 : vector<8x32xf32>
    %cst_12 = arith.constant dense<0.000000e+00> : vector<8x32xf32>
    %15 = tpu.matmul %14, %3, %cst_12 {dimension_numbers = #tpu.dot_dimension_numbers<[1], [0], [0], [1], [0, 0, 1, 1], [], []>} : vector<8x32xf32>, vector<32x32xf32>, vector<8x32xf32> -> vector<8x32xf32>
    %16 = vector.broadcast %4 : vector<1x32xf32> to vector<8x32xf32>
    %17 = arith.addf %15, %16 : vector<8x32xf32>
    %cst_13 = arith.constant 0.000000e+00 : f32
    %18 = vector.broadcast %cst_13 : f32 to vector<8x32xf32>
    %19 = arith.maximumf %17, %18 : vector<8x32xf32>
    %20 = vector.broadcast %5 : vector<1x32xf32> to vector<8x32xf32>
    %21 = arith.mulf %19, %20 : vector<8x32xf32>
    %cst_14 = arith.constant dense<0.000000e+00> : vector<8xf32>
    %22 = vector.multi_reduction <add>, %21, %cst_14 [1] : vector<8x32xf32> to vector<8xf32>
    %23 = vector.shape_cast %22 : vector<8xf32> to vector<8x1xf32>
    %c0_15 = arith.constant 0 : index
    %24 = memref.load %arg4[%c0_15] : memref<1xf32, #tpu.memory_space<smem>>
    %25 = vector.broadcast %24 : f32 to vector<8x1xf32>
    %26 = arith.addf %23, %25 : vector<8x1xf32>
    %c0_16 = arith.constant 0 : index
    %c0_17 = arith.constant 0 : index
    %27 = vector.load %arg5[%c0_16, %c0_17] : memref<8x1xf32, #tpu.memory_space<vmem>>, vector<8x1xf32>
    tpu.vector_store %arg5[%c0_16, %c0_17], %26 {strides = array<i32>} : memref<8x1xf32, #tpu.memory_space<vmem>>, vector<8x1xf32>,
    return
  }
  func.func @transform_0(%arg0: i32) -> (i32, i32) {
    %c0_i32 = arith.constant 0 : i32
    %c0_i32_0 = arith.constant 0 : i32
    return %arg0, %c0_i32 : i32, i32
  }
  func.func @transform_1(%arg0: i32) -> (i32, i32) {
    %c0_i32 = arith.constant 0 : i32
    %c0_i32_0 = arith.constant 0 : i32
    return %arg0, %c0_i32 : i32, i32
  }
  func.func @transform_2(%arg0: i32) -> (i32, i32) {
    %c0_i32 = arith.constant 0 : i32
    %c0_i32_0 = arith.constant 0 : i32
    %c0_i32_1 = arith.constant 0 : i32
    return %c0_i32, %c0_i32_0 : i32, i32
  }
  func.func @transform_3(%arg0: i32) -> i32 {
    %c0_i32 = arith.constant 0 : i32
    %c0_i32_0 = arith.constant 0 : i32
    return %c0_i32 : i32
  }
  func.func @transform_4(%arg0: i32) -> (i32, i32) {
    %c0_i32 = arith.constant 0 : i32
    %c0_i32_0 = arith.constant 0 : i32
    return %arg0, %c0_i32 : i32, i32
  }
}

</mosaic_0001>

<bundles_post_ra>
// kernel: tpu_custom_call.1
= control target key start
LH: loop header
LB: loop body
LE: loop exit
PB: predicated region body
PF: predicated region fallthrough
CT: control target
= control target key end

     0   :  { %vm34_vm0 = vcmask 1043456   ;;  %vm30_vm1 = vcmask 31744   ;;  %v336_v0 = vmov 0.0   ;;  %vm337_vm2 = vmmov 0   ;;  %s406_s2 = inlined_call_operand.vmem [shape: f32[80,32], index: 2, kind: input, shape index: {}]   ;;  %s407_s1 = inlined_call_operand.vmem [shape: f32[8,4], index: 1, kind: input, shape index: {}]   ;;  %s408_s0 = inlined_call_operand.vmem [shape: f32[8,16], index: 0, kind: input, shape index: {}]   ;;  %s409_s3 = inlined_call_operand.<no memory space> [shape: f32[1], index: 3, kind: input, shape index: {}]   ;;  %s410_s4 = inlined_call_operand.vmem [shape: f32[8,1], index: 4, kind: output, shape index: {}]  }
   0x1   :  { %301 = vmatprep.subr.mxu1 %v336_v0  ;;  %v20_v1 = vld [vmem:[%s406_s2 + $0x10] sm:$0xf]  ;;  %303 = vmatprep.mubr.msk.f32.mxu1 %vm337_vm2, %v336_v0  ;;  %v29_v2 = vld [vmem:[%s407_s1] sm:$0xff]  ;;  %v19_v4 = vld [vmem:[%s406_s2 + $0x8] sm:$0xff]  ;;  %v338_v5 = vmov 0.0|0.0   ;;  %vm108_vm3 = vcmask 130048   ;;  %v276_v30 = vstv %s409_s3 }
   0x2   :  { %v18_v3 = vld [vmem:[%s406_s2] sm:$0xff]  ;;  %302 = vmatpush3.msk.msra.mxu1 %vm34_vm0, %v20_v1  ;;  %327 = vmatprep.subr.bf16.mxu0 %v338_v5  ;;  %v23_v9 = vld [vmem:[%s406_s2 + $0x28] sm:$0xff]  ;;  %v24_v11 = vld [vmem:[%s406_s2 + $0x30] sm:$0xff]  ;;  %vm192_vm4 = vcmask 261120   ;;  %vm278_vm5 = vcmask 7168  }
   0x3   :  { %304 = vmatmul.mubr.msk.f32.vlgmr.msra.gmra.mrb[0].mxu1 %vm30_vm1, %v29_v2  ;;  %324 = vmatprep.subr.bf16.mxu1 %v338_v5  ;;  %v325_v6 = vpack.c.bf16 %v19_v4, %v18_v3  ;;  %v28_v7 = vld [vmem:[%s408_s0] sm:$0xff]  ;;  %v25_v12 = vld [vmem:[%s406_s2 + $0x38] sm:$0xff]  ;;  %v290_v26 = vld [vmem:[%s406_s2 + $0x48] ss:$0 sm:$0xff] }
   0x4   :  { %310 = vmatprep.mubr.msk.f32.mxu1 %vm337_vm2, %v336_v0  ;;  %321 = vmatprep.mubr.msk.f32.mxu0 %vm337_vm2, %v336_v0  ;;  %v22_v8 = vld [vmem:[%s406_s2 + $0x20] sm:$0xff]  ;;  %v331_v13 = vpack.c.bf16 %v25_v12, %v24_v11  ;;  %v287_v16 = vld [vmem:[%s406_s2 + $0x18] ss:$0 sm:$0xff] }
   0x5   :  { %326 = vmatpush3.bf16.msra.mxu1 %v325_v6  ;;  %v328_v10 = vpack.c.bf16 %v23_v9, %v22_v8  ;;  %v288_v22 = vld [vmem:[%s406_s2 + $0x40] ss:$0 sm:$0xff] }
   0x7   :  { %329 = vmatpush3.bf16.msra.mxu0 %v328_v10 }
   0x8   :  { %311 = vmatmul.mubr.msk.f32.vlgmr.msra.gmra.mrb[2].mxu1 %vm108_vm3, %v28_v7  ;;  %330 = vmatprep.subr.bf16.mxu0 %v338_v5 }
   0xb   :  { %332 = vmatpush3.bf16.msra.mxu0 %v331_v13 }
  0xd6   :  { %v104_v14 = vpop.f32.mrb[0].mxu1 }
  0xd7   :  { %v305_v15 = vpop.f32.mrb[1].mxu1 }
  0xdb   :  { %v178_v17 = vpop.f32.mrb[2].mxu1 }
  0xdc   :  { %v179_v18 = vadd.f32 %v178_v17, %v104_v14  ;;  %v312_v19 = vpop.f32.mrb[3].mxu1 }
  0xde   :  { %v186_v20 = vadd.f32 %v287_v16, %v179_v18 }
  0xe0   :  { %v187_v21 = vmax.f32 %v186_v20, 0.0 }
  0xe2   :  { %322 = vmatmul.mubr.msk.f32.vlgmr.msra.gmra.mrb[0].mxu0 %vm192_vm4, %v187_v21 }
 0x1b5   :  { %v262_v23 = vpop.f32.mrb[0].mxu0 }
 0x1b6   :  { %v263_v24 = vadd.f32 %v288_v22, %v262_v23  ;;  %v323_v25 = vpop.f32.mrb[1].mxu0 }
 0x1b8   :  { %v266_v27 = vmax.f32 %v263_v24, 0.0 }
 0x1ba   :  { %v271_v28 = vmul.f32 %v290_v26, %v266_v27 }
 0x1bc   :  { %v272_v29 = vsel %vm192_vm4, %v271_v28, 0.0 }
 0x1bd   :  { %273 = vadd.xlane.f32.xlu0 %v272_v29 }
 0x24a   :  { %v274_v31 = vpop.xlane.xlu0 %273 }
 0x24b   :  { %v277_v32 = vadd.f32 %v276_v30, %v274_v31 }
 0x24d   :  { %279 = vst.msk [vmem:[%s410_s4] sm:$0xff] %vm278_vm5, %v277_v32 }

</bundles_post_ra>
